<compile_context>
chip_gen: v5e
topology: v5e:2x2
jax: 0.10.0
libtpu: 0.0.40
codegen_flags: <defaults>
</compile_context>

<pallas_src>
import jax
import jax.numpy as jnp
from jax.experimental import pallas as pl
from jax.experimental.pallas import tpu as pltpu

FOCAL_GAMMA = 2.0  # module default is 0 (== plain CE); 2 exercises the focal path

_VMEM_LIMIT_BYTES = 48 * 1024 * 1024      # headroom under v7x's 64 MiB physical VMEM
_ROW_BUDGET_BYTES = 40 * 1024 * 1024      # total row-proportional VMEM budget


def _choose_tile_n(n, c, itemsize):
    """Rows per tile, sized against the real (double-buffered + padded) VMEM use."""
    per_row = (
        2 * c * itemsize   # logits block, double-buffered
        + 2 * 512          # (tile_n,1) int32 target block pads to 128 lanes, x2 buffers
        + 2 * c * 4        # f32 temporaries inside the body (z / exp(z) / select)
    )
    t = _ROW_BUDGET_BYTES // max(1, per_row)
    t = min(t, n)
    if t >= n:
        return n                      # full extent: any row count is legal
    return max(8, (t // 8) * 8)       # tiled: sublane dim must be a multiple of 8


def focal_loss(y, target, gamma=FOCAL_GAMMA, tile_n=None):
    """y: (N, C) float logits, target: (N,) int class indices -> scalar f32."""
    n, c = y.shape
    itemsize = jnp.dtype(y.dtype).itemsize
    if tile_n is None:
        tile_n = _choose_tile_n(n, c, itemsize)
    g = pl.cdiv(n, tile_n)
    t2d = target.astype(jnp.int32).reshape(n, 1)

    def kernel(y_ref, t_ref, part_ref):
        i = pl.program_id(0)
        y_blk = y_ref[...]            # (tile_n, C) in storage dtype (f32 or bf16)
        t_blk = t_ref[...]            # (tile_n, 1) int32

        # validity mask for the ragged last tile (narrow column only)
        rows = jax.lax.broadcasted_iota(jnp.int32, (tile_n, 1), 0)
        valid = (i * tile_n + rows) < n                        # (tile_n, 1) bool

        # numerically stable per-row logsumexp; upcast inside the expression
        m = jnp.max(y_blk, axis=-1, keepdims=True)
        z = (y_blk - m).astype(jnp.float32)
        lse = (jnp.log(jnp.sum(jnp.exp(z), axis=-1, keepdims=True))
               + m.astype(jnp.float32))                        # (tile_n, 1) f32

        # picked target logit: (1, C) iota broadcast against (tile_n, 1) targets,
        # per-row masked sum -> (tile_n, 1). No full-tile iota, no full-tile
        # validity AND; validity is applied to the narrow nll column instead.
        col = jax.lax.broadcasted_iota(jnp.int32, (1, c), 1)
        picked = jnp.sum(jnp.where(col == t_blk, y_blk, 0).astype(jnp.float32),
                         axis=-1, keepdims=True)               # (tile_n, 1) f32
        nll = jnp.where(valid, lse - picked, 0.0)              # (tile_n, 1) f32

        partial = jnp.sum(nll)                                 # per-tile NLL sum
        # lane-dense full-vreg store of the per-tile partial
        part_ref[...] = jnp.full(part_ref.shape, partial, dtype=jnp.float32)

    cost = pl.CostEstimate(
        flops=6 * n * c,
        transcendentals=n * c,
        bytes_accessed=n * c * itemsize + 4 * n + 4096 * g,
    )

    # TODO(synk): sweep pipeline_mode=pl.Buffered(3) on the logits BlockSpec on
    # v7x once blocks are large; typically a few percent, left at default here.
    partials = pl.pallas_call(
        kernel,
        out_shape=jax.ShapeDtypeStruct((g, 8, 128), jnp.float32),
        grid=(g,),
        in_specs=[
            pl.BlockSpec((tile_n, c), lambda i: (i, 0)),
            pl.BlockSpec((tile_n, 1), lambda i: (i, 0)),
        ],
        out_specs=pl.BlockSpec((1, 8, 128), lambda i: (i, 0, 0)),
        compiler_params=pltpu.CompilerParams(
            dimension_semantics=("parallel",),          # megacore-shardable on v7x
            vmem_limit_bytes=_VMEM_LIMIT_BYTES,
        ),
        cost_estimate=cost,
    )(y, t2d)

    # finalize: mean CE over the true N, then focal transform (scalar ops)
    ce = jnp.sum(partials[:, 0, 0]) / n
    p = jnp.exp(-ce)
    return ((1.0 - p) ** gamma * ce).astype(jnp.float32)


def _reference(y, target, gamma):
    # pure-JAX reference for sanity checking
    yf = y.astype(jnp.float32)
    logp = jax.nn.log_softmax(yf, axis=-1)
    nll = -jnp.take_along_axis(logp, target[:, None].astype(jnp.int32), axis=-1)[:, 0]
    ce = jnp.mean(nll)
    p = jnp.exp(-ce)
    return (1.0 - p) ** gamma * ce


if __name__ == "__main__":
    key = jax.random.PRNGKey(0)
    k1, k2 = jax.random.split(key)
    N, C = 20, 128                      # small shape consistent with a classifier head
    y = jax.random.normal(k1, (N, C), dtype=jnp.float32)
    target = jax.random.randint(k2, (N,), 0, C, dtype=jnp.int32)

    ref = _reference(y, target, FOCAL_GAMMA)

    # auto-tiled path (full-extent block here since N is tiny)
    out_auto = focal_loss(y, target, gamma=FOCAL_GAMMA)
    jax.block_until_ready(out_auto)
    assert jnp.allclose(out_auto, ref, rtol=1e-5, atol=1e-5), (out_auto, ref)

    # forced small tile -> 3 tiles with a ragged last tile (exercises masking)
    out_tiled = focal_loss(y, target, gamma=FOCAL_GAMMA, tile_n=8)
    jax.block_until_ready(out_tiled)
    assert jnp.allclose(out_tiled, ref, rtol=1e-5, atol=1e-5), (out_tiled, ref)

    print("KERNEL_OK")
</pallas_src>

<mosaic_0001>
module attributes {stable_mosaic.version = 11 : i64} {
  func.func @kernel(%arg0: i32, %arg1: memref<20x128xf32, #tpu.memory_space<vmem>>, %arg2: memref<20x1xi32, #tpu.memory_space<vmem>>, %arg3: memref<1x8x128xf32, #tpu.memory_space<vmem>>) attributes {dimension_semantics = [#tpu.dimension_semantics<parallel>], iteration_bounds = array<i64: 1>, scalar_prefetch = 0 : i64, scratch_operands = 0 : i64, tpu.core_type = #tpu.core_type<tc>, window_params = [{transform_indices = @transform_0, window_bounds = array<i64: 20, 128>}, {transform_indices = @transform_1, window_bounds = array<i64: 20, 1>}, {transform_indices = @transform_2, window_bounds = array<i64: 1, 8, 128>}]} {
    %c0 = arith.constant 0 : index
    %c0_0 = arith.constant 0 : index
    %0 = vector.load %arg1[%c0, %c0_0] : memref<20x128xf32, #tpu.memory_space<vmem>>, vector<20x128xf32>
    %c0_1 = arith.constant 0 : index
    %c0_2 = arith.constant 0 : index
    %1 = vector.load %arg2[%c0_1, %c0_2] : memref<20x1xi32, #tpu.memory_space<vmem>>, vector<20x1xi32>
    %2 = tpu.iota {dimensions = array<i32: 0>} : vector<20x1xi32>
    %c20_i32 = arith.constant 20 : i32
    %3 = arith.muli %arg0, %c20_i32 : i32
    %4 = vector.broadcast %3 : i32 to vector<20x1xi32>
    %5 = arith.addi %4, %2 : vector<20x1xi32>
    %c20_i32_3 = arith.constant 20 : i32
    %6 = vector.broadcast %c20_i32_3 : i32 to vector<20x1xi32>
    %7 = arith.cmpi slt, %5, %6 : vector<20x1xi32>
    %cst = arith.constant dense<0xFF800000> : vector<20xf32>
    %8 = vector.multi_reduction <maximumf>, %0, %cst [1] : vector<20x128xf32> to vector<20xf32>
    %9 = vector.shape_cast %8 : vector<20xf32> to vector<20x1xf32>
    %10 = vector.broadcast %9 : vector<20x1xf32> to vector<20x128xf32>
    %11 = arith.subf %0, %10 : vector<20x128xf32>
    %12 = math.exp %11 : vector<20x128xf32>
    %cst_4 = arith.constant dense<0.000000e+00> : vector<20xf32>
    %13 = vector.multi_reduction <add>, %12, %cst_4 [1] : vector<20x128xf32> to vector<20xf32>
    %14 = vector.shape_cast %13 : vector<20xf32> to vector<20x1xf32>
    %15 = math.log %14 : vector<20x1xf32>
    %16 = arith.addf %15, %9 : vector<20x1xf32>
    %17 = tpu.iota {dimensions = array<i32: 1>} : vector<1x128xi32>
    %18 = vector.broadcast %17 : vector<1x128xi32> to vector<20x128xi32>
    %19 = vector.broadcast %1 : vector<20x1xi32> to vector<20x128xi32>
    %20 = arith.cmpi eq, %18, %19 : vector<20x128xi32>
    %c0_i32 = arith.constant 0 : i32
    %21 = arith.sitofp %c0_i32 : i32 to f32
    %22 = vector.broadcast %21 : f32 to vector<20x128xf32>
    %23 = arith.select %20, %0, %22 : vector<20x128xi1>, vector<20x128xf32>
    %cst_5 = arith.constant dense<0.000000e+00> : vector<20xf32>
    %24 = vector.multi_reduction <add>, %23, %cst_5 [1] : vector<20x128xf32> to vector<20xf32>
    %25 = vector.shape_cast %24 : vector<20xf32> to vector<20x1xf32>
    %26 = arith.subf %16, %25 : vector<20x1xf32>
    %cst_6 = arith.constant 0.000000e+00 : f32
    %27 = vector.broadcast %cst_6 : f32 to vector<20x1xf32>
    %28 = arith.select %7, %26, %27 : vector<20x1xi1>, vector<20x1xf32>
    %29 = vector.shape_cast %28 : vector<20x1xf32> to vector<1x20x1xf32>
    %cst_7 = arith.constant dense<0.000000e+00> : vector<1xf32>
    %30 = vector.multi_reduction <add>, %29, %cst_7 [1, 2] : vector<1x20x1xf32> to vector<1xf32>
    %31 = vector.shape_cast %30 : vector<1xf32> to vector<1x1x1xf32>
    %32 = vector.extract %31[0, 0, 0] : f32 from vector<1x1x1xf32>
    %33 = vector.broadcast %32 : f32 to vector<1x8x128xf32>
    %c0_8 = arith.constant 0 : index
    %c0_9 = arith.constant 0 : index
    %c0_10 = arith.constant 0 : index
    %34 = vector.load %arg3[%c0_8, %c0_9, %c0_10] : memref<1x8x128xf32, #tpu.memory_space<vmem>>, vector<1x8x128xf32>
    tpu.vector_store %arg3[%c0_8, %c0_9, %c0_10], %33 {strides = array<i32>} : memref<1x8x128xf32, #tpu.memory_space<vmem>>, vector<1x8x128xf32>,
    return
  }
  func.func @transform_0(%arg0: i32) -> (i32, i32) {
    %c0_i32 = arith.constant 0 : i32
    %c0_i32_0 = arith.constant 0 : i32
    return %arg0, %c0_i32 : i32, i32
  }
  func.func @transform_1(%arg0: i32) -> (i32, i32) {
    %c0_i32 = arith.constant 0 : i32
    %c0_i32_0 = arith.constant 0 : i32
    return %arg0, %c0_i32 : i32, i32
  }
  func.func @transform_2(%arg0: i32) -> (i32, i32, i32) {
    %c0_i32 = arith.constant 0 : i32
    %c0_i32_0 = arith.constant 0 : i32
    %c0_i32_1 = arith.constant 0 : i32
    return %arg0, %c0_i32, %c0_i32_0 : i32, i32, i32
  }
}

</mosaic_0001>

<bundles_post_ra>
// kernel: tpu_custom_call.1
= control target key start
LH: loop header
LB: loop body
LE: loop exit
PB: predicated region body
PF: predicated region fallthrough
CT: control target
= control target key end

     0   :  { %vm34_vm0 = vcmask 1043456   ;;  %v172_v3 = vmov 0   ;;  %s213_s0 = inlined_call_operand.vmem [shape: f32[20,128], index: 0, kind: input, shape index: {}]   ;;  %s214_s1 = inlined_call_operand.vmem [shape: s32[20,1], index: 1, kind: input, shape index: {}]   ;;  %s215_s2 = inlined_call_operand.hbm [shape: f32[1,8,128], index: 2, kind: output, shape index: {}]  }
   0x1   :  { %v12_v0 = vld [vmem:[%s213_s0] sm:$0xff]  ;;  %v14_v1 = vld [vmem:[%s213_s0 + $0x10] sm:$0xf]  ;;  %131 = vset.pattern.permute.xlu1 %v172_v3  ;;  %v16_v4 = vld [vmem:[%s214_s1 + $0x8] sm:$0xff]  ;;  %132 = vset.pattern.permute.xlu2 %v172_v3 }
   0x2   :  { %30 = vmax.xlane.f32.xlu0 %v12_v0  ;;  %v35_v2 = vsel %vm34_vm0, %v14_v1, -inf }
   0x3   :  { %36 = vmax.xlane.f32.xlu1 %v35_v2 }
   0x4   :  { %7 = vsyncpa [#allocation3], 0  ;;  %69 = vperm.xlu2 %132, %v16_v4   ;;  %133 = vset.pattern.permute.xlu0 %v172_v3  ;;  %v13_v5 = vld [vmem:[%s213_s0 + $0x8] sm:$0xff]  ;;  %v17_v6 = vld [vmem:[%s214_s1 + $0x10] sm:$0xf]  ;;  %v18_v8 = vlaneseq  ;;  %vm93_vm4 = vcmask 7168  }
   0x5   :  { %v15_v7 = vld [vmem:[%s214_s1] sm:$0xff]  ;;  %vm97_vm6 = vcmask 3072   ;;  %s173_s0 = smov [#allocation2]   ;;  %s118_s23 = sshll.u32 %s215_s2, 4  ;;  %s119_s23 = int_to_ptr.hbm [resolvable:$true] %s118_s23 }
   0x6   :  { %v64_v9 = vand.u32 127, %v18_v8  ;;  %v19_v39 = vshrl.u32 %v18_v8, 7  ;;  %s116_s1 = sshll.u32 %s173_s0, 4  ;;  %s117_s1 = int_to_ptr.vmem [resolvable:$true] %s116_s1 }
   0x8   :  { %v21_v45 = vadd.s32 16, %v19_v39 }
   0xa   :  { %32 = vmax.xlane.f32.xlu0 %v13_v5  ;;  %vm29_vm5 = vcmp.lt.s32.totalorder %v21_v45, 20 }
   0xc   :  { %72 = vperm.xlu2 %132, %v17_v6  }
  0x1c   :  { %66 = vperm.xlu1 %131, %v15_v7  }
  0x5e   :  { %v70_v10 = vpop.permute.xlu2 %69 }
  0x5f   :  { %vm75_vm1 = vcmp.eq.s32.totalorder %v64_v9, %v70_v10 }
  0x60   :  { %v78_v11 = vsel %vm75_vm1, %v13_v5, 0.0 }
  0x61   :  { %82 = vadd.xlane.f32.xlu1 %v78_v11 }
  0x66   :  { %v73_v26 = vpop.permute.xlu2 %72 }
  0x67   :  { %vm76_vm3 = vcmp.eq.s32.totalorder %v64_v9, %v73_v26 }
  0x68   :  { %v79_v28 = vsel %vm76_vm3, %v14_v1, 0.0 }
  0x69   :  { %v84_v29 = vsel %vm34_vm0, %v79_v28, 0.0 }
  0x75   :  { %v31_v12 = vpop.xlane.xlu0 %30 }
  0x76   :  { %v38_v13 = vsub.f32 %v12_v0, %v31_v12  ;;  %v37_v14 = vpop.xlane.xlu1 %36 }
  0x77   :  { %v40_v15 = vsub.f32 %v14_v1, %v37_v14 }
  0x78   :  { %v41_v16 = vmul.f32 1.442695, %v38_v13 }
  0x79   :  { %v45_v17 = vmul.f32 1.442695, %v40_v15 }
  0x7a   :  { %134 = vpow2.f32 %v41_v16 }
  0x7b   :  { %136 = vpow2.f32 %v45_v17 }
  0x7d   :  { %v33_v18 = vpop.xlane.xlu0 %32 }
  0x7e   :  { %v39_v19 = vsub.f32 %v13_v5, %v33_v18 }
  0x80   :  { %v135_v20 = vpop.eup %134  ;;  %v43_v21 = vmul.f32 1.442695, %v39_v19 }
  0x81   :  { %47 = vadd.xlane.f32.xlu0 %v135_v20  ;;  %v137_v22 = vpop.eup %136 }
  0x82   :  { %138 = vpow2.f32 %v43_v21  ;;  %v51_v24 = vsel %vm34_vm0, %v137_v22, 0.0 }
  0x88   :  { %v139_v23 = vpop.eup %138 }
  0x89   :  { %52 = vadd.xlane.f32.xlu0 %v51_v24  ;;  %49 = vadd.xlane.f32.xlu2 %v139_v23 }
  0x8e   :  { %v67_v25 = vpop.permute.xlu1 %66 }
  0x8f   :  { %vm74_vm2 = vcmp.eq.s32.totalorder %v64_v9, %v67_v25 }
  0x90   :  { %v77_v27 = vsel %vm74_vm2, %v12_v0, 0.0 }
  0x91   :  { %80 = vadd.xlane.f32.xlu0 %v77_v27 }
  0x99   :  { %85 = vadd.xlane.f32.xlu0 %v84_v29 }
  0xd4   :  { %v83_v42 = vpop.xlane.xlu1 %82 }
  0xf4   :  { %v48_v30 = vpop.xlane.xlu0 %47 }
  0xf5   :  { %140 = vlog2.f32 %v48_v30 }
  0xfb   :  { %v141_v33 = vpop.eup %140 }
  0xfc   :  { %v50_v31 = vpop.xlane.xlu2 %49  ;;  %v53_v32 = vpop.xlane.xlu0 %52  ;;  %v55_v36 = vmul.f32 0.6931472, %v141_v33 }
  0xfd   :  { %142 = vlog2.f32 %v50_v31 }
  0xfe   :  { %144 = vlog2.f32 %v53_v32  ;;  %v60_v44 = vadd.f32 %v55_v36, %v31_v12 }
 0x103   :  { %v143_v34 = vpop.eup %142 }
 0x104   :  { %v145_v35 = vpop.eup %144  ;;  %v57_v37 = vmul.f32 0.6931472, %v143_v34  ;;  %v81_v38 = vpop.xlane.xlu0 %80 }
 0x105   :  { %v59_v41 = vmul.f32 0.6931472, %v145_v35  ;;  %v87_v46 = vsub.f32 %v60_v44, %v81_v38 }
 0x106   :  { %v61_v40 = vadd.f32 %v57_v37, %v33_v18 }
 0x107   :  { %v62_v47 = vadd.f32 %v59_v41, %v37_v14  ;;  %v94_v51 = vsel %vm93_vm4, %v87_v46, 0.0 }
 0x108   :  { %v88_v43 = vsub.f32 %v61_v40, %v83_v42 }
 0x10a   :  { %v95_v48 = vsel %vm93_vm4, %v88_v43, 0.0 }
 0x10b   :  { %v96_v53 = vadd.f32 %v95_v48, %v94_v51 }
 0x10c   :  { %v86_v49 = vpop.xlane.xlu0 %85 }
 0x10d   :  { %v89_v50 = vsub.f32 %v62_v47, %v86_v49 }
 0x10f   :  { %v92_v52 = vsel %vm29_vm5, %v89_v50, 0.0 }
 0x110   :  { %v98_v54 = vsel %vm97_vm6, %v92_v52, 0.0 }
 0x111   :  { %v99_v55 = vadd.f32 %v98_v54, %v96_v53 }
 0x113   :  { %100 = vadd.xlane.f32.xlu0 %v99_v55 }
 0x186   :  { %v101_v56 = vpop.xlane.xlu0 %100 }
 0x187   :  { %v102_v57 = vrot.slane %v101_v56, 4 }
 0x189   :  { %v103_v58 = vadd.f32 %v102_v57, %v101_v56 }
 0x18b   :  { %v104_v59 = vrot.slane %v103_v58, 2 }
 0x18d   :  { %v105_v60 = vadd.f32 %v104_v59, %v103_v58 }
 0x18f   :  { %v106_v61 = vrot.slane %v105_v60, 1 }
 0x191   :  { %v107_v62 = vadd.f32 %v106_v61, %v105_v60 }
 0x193   :  { %127 = vpush %v107_v62 }
 0x1c4   :  { %s128_s24 = spop %127 }
 0x1c5   :  { %v109_v63 = vstv %s128_s24 }
 0x1c6   :  { %110 = vst [vmem:[#allocation2] sm:$0xff] %v109_v63 }
 0x1c7   :  { %121 = dma.vmem_to_hbm [thread:$0]  %s117_s1, 128, %s119_s23, [#allocation3]  }
 0x1c8   :  { %170 = dma.done.wait [#allocation3], 128  }
 0x1c9   :  { %171 = vsyncadd [#allocation3], 4294967168 }
 0x1ca   :  { %126 = vsyncpa [#allocation3], 1 }

</bundles_post_ra>
